<compile_context>
chip_gen: v5e
topology: v5e:2x2
jax: 0.10.0
libtpu: 0.0.40
codegen_flags: <defaults>
</compile_context>

<pallas_src>
import functools

import jax
import jax.numpy as jnp
from jax.experimental import pallas as pl
from jax.experimental.pallas import tpu as pltpu


def _round_up(n: int, m: int) -> int:
    return ((n + m - 1) // m) * m


def receiver_kernel(x_ref, w1_ref, b1_ref, w2_ref, b2_ref, o_ref):
    """One batch tile: y = (x @ W1 + b1) @ W2 + b2, all operands VMEM-resident."""
    x = x_ref[...]                                          # (TB, H)  compute dtype
    # fc1: MXU matmul, f32 accumulation, f32 bias add (VPU, free slot).
    h = jnp.dot(x, w1_ref[...],
                preferred_element_type=jnp.float32) + b1_ref[...]      # (TB, H) f32
    # fc2: cast back to the MXU operand dtype (no-op when compute dtype is f32).
    h = h.astype(w2_ref.dtype)
    y = jnp.dot(h, w2_ref[...],
                preferred_element_type=jnp.float32) + b2_ref[...]      # (TB, Npad) f32
    o_ref[...] = y.astype(o_ref.dtype)


@functools.partial(jax.jit, static_argnames=("block_b", "compute_dtype"))
def receiver_forward(x, _unused, w1, b1, w2, b2, *,
                     block_b: int = 512, compute_dtype=jnp.float32):
    """Pallas replica of Receiver.forward(x, _).

    x  : (B, n_hidden) float32
    w1 : (n_hidden, n_hidden)   -- fc1.weight transposed to (in, out)
    b1 : (1, n_hidden)
    w2 : (n_hidden, n_outputs)  -- fc2.weight transposed to (in, out)
    b2 : (1, n_outputs)
    """
    out_dtype = x.dtype
    B, H = x.shape
    N = w2.shape[1]

    # ---- lane-dense output: pad n_outputs to a multiple of 128 (zero cols). ----
    N_pad = _round_up(N, 128)
    if N_pad != N:
        w2 = jnp.pad(w2, ((0, 0), (0, N_pad - N)))
        b2 = jnp.pad(b2, ((0, 0), (0, N_pad - N)))

    # ---- batch tiling: largest tile <= block_b, batch padded to a multiple. ----
    TB = min(block_b, _round_up(B, 8))
    B_pad = _round_up(B, TB)
    if B_pad != B:
        x = jnp.pad(x, ((0, B_pad - B), (0, 0)))

    # ---- MXU operand dtype (bf16 halves bytes moved); biases stay f32. ----
    x_c = x.astype(compute_dtype)
    w1_c = w1.astype(compute_dtype)
    w2_c = w2.astype(compute_dtype)
    b1_f = b1.astype(jnp.float32)
    b2_f = b2.astype(jnp.float32)

    grid = (pl.cdiv(B_pad, TB),)
    out = pl.pallas_call(
        receiver_kernel,
        out_shape=jax.ShapeDtypeStruct((B_pad, N_pad), out_dtype),
        grid=grid,
        in_specs=[
            pl.BlockSpec((TB, H), lambda i: (i, 0)),          # streamed activations
            pl.BlockSpec(w1_c.shape, lambda i: (0, 0)),       # VMEM-resident weights
            pl.BlockSpec(b1_f.shape, lambda i: (0, 0)),
            pl.BlockSpec(w2_c.shape, lambda i: (0, 0)),
            pl.BlockSpec(b2_f.shape, lambda i: (0, 0)),
        ],
        out_specs=pl.BlockSpec((TB, N_pad), lambda i: (i, 0)),
        compiler_params=pltpu.CompilerParams(
            dimension_semantics=("parallel",),                # v7x: shard batch across 2 TCs
        ),
    )(x_c, w1_c, b1_f, w2_c, b2_f)

    # Slice away batch padding and the lane padding of the output.
    return out[:B, :N]


def init_params(key, n_hidden, n_outputs):
    """Synthetic params matching nn.Linear shapes (stored transposed: (in, out)).

    Uses torch's default U(-1/sqrt(fan_in), 1/sqrt(fan_in)) init.
    """
    k1, k2, k3, k4 = jax.random.split(key, 4)
    lim1 = 1.0 / jnp.sqrt(n_hidden)
    lim2 = 1.0 / jnp.sqrt(n_hidden)
    w1 = jax.random.uniform(k1, (n_hidden, n_hidden), jnp.float32, -lim1, lim1)
    b1 = jax.random.uniform(k2, (1, n_hidden), jnp.float32, -lim1, lim1)
    w2 = jax.random.uniform(k3, (n_hidden, n_outputs), jnp.float32, -lim2, lim2)
    b2 = jax.random.uniform(k4, (1, n_outputs), jnp.float32, -lim2, lim2)
    return w1, b1, w2, b2


if __name__ == "__main__":
    n_hidden = 32
    n_outputs = 16
    batch = 8

    key = jax.random.PRNGKey(0)
    kx, kp = jax.random.split(key)
    x = jax.random.normal(kx, (batch, n_hidden), jnp.float32)
    dummy_msg = jnp.zeros((batch, 1), jnp.float32)   # the ignored `_` argument

    w1, b1, w2, b2 = init_params(kp, n_hidden, n_outputs)

    # --- small-batch f32 run: exact match against the plain-JAX reference. ---
    out = receiver_forward(x, dummy_msg, w1, b1, w2, b2,
                           compute_dtype=jnp.float32)
    out = jax.block_until_ready(out)
    ref = (x @ w1 + b1) @ w2 + b2
    assert out.shape == (batch, n_outputs)
    assert jnp.allclose(out, ref, atol=1e-5, rtol=1e-5)

    # --- batched bf16-MXU run: exercises the batch grid (2 tiles of 512),
    #     parallel dimension_semantics, resident weights, lane-padded output. ---
    big_batch = 1024
    xb = jax.random.normal(jax.random.PRNGKey(1), (big_batch, n_hidden), jnp.float32)
    out_bf = receiver_forward(xb, None, w1, b1, w2, b2,
                              block_b=512, compute_dtype=jnp.bfloat16)
    out_bf = jax.block_until_ready(out_bf)
    ref_bf = (xb @ w1 + b1) @ w2 + b2
    assert out_bf.shape == (big_batch, n_outputs)
    assert jnp.allclose(out_bf, ref_bf, atol=5e-2, rtol=5e-2)

    print("KERNEL_OK")
</pallas_src>

<mosaic_0001>
module attributes {stable_mosaic.version = 11 : i64} {
  func.func @receiver_kernel(%arg0: i32, %arg1: memref<8x32xf32, #tpu.memory_space<vmem>>, %arg2: memref<32x32xf32, #tpu.memory_space<vmem>>, %arg3: memref<1x32xf32, #tpu.memory_space<vmem>>, %arg4: memref<32x128xf32, #tpu.memory_space<vmem>>, %arg5: memref<1x128xf32, #tpu.memory_space<vmem>>, %arg6: memref<8x128xf32, #tpu.memory_space<vmem>>) attributes {dimension_semantics = [#tpu.dimension_semantics<parallel>], iteration_bounds = array<i64: 1>, scalar_prefetch = 0 : i64, scratch_operands = 0 : i64, tpu.core_type = #tpu.core_type<tc>, window_params = [{transform_indices = @transform_0, window_bounds = array<i64: 8, 32>}, {pipeline_mode = #tpu.pipeline_mode<synchronous>, transform_indices = @transform_1, window_bounds = array<i64: 32, 32>}, {pipeline_mode = #tpu.pipeline_mode<synchronous>, transform_indices = @transform_2, window_bounds = array<i64: 1, 32>}, {pipeline_mode = #tpu.pipeline_mode<synchronous>, transform_indices = @transform_3, window_bounds = array<i64: 32, 128>}, {pipeline_mode = #tpu.pipeline_mode<synchronous>, transform_indices = @transform_4, window_bounds = array<i64: 1, 128>}, {transform_indices = @transform_5, window_bounds = array<i64: 8, 128>}]} {
    %c0 = arith.constant 0 : index
    %c0_0 = arith.constant 0 : index
    %0 = vector.load %arg1[%c0, %c0_0] : memref<8x32xf32, #tpu.memory_space<vmem>>, vector<8x32xf32>
    %c0_1 = arith.constant 0 : index
    %c0_2 = arith.constant 0 : index
    %1 = vector.load %arg2[%c0_1, %c0_2] : memref<32x32xf32, #tpu.memory_space<vmem>>, vector<32x32xf32>
    %cst = arith.constant dense<0.000000e+00> : vector<8x32xf32>
    %2 = tpu.matmul %0, %1, %cst {dimension_numbers = #tpu.dot_dimension_numbers<[1], [0], [0], [1], [0, 0, 1, 1], [], []>} : vector<8x32xf32>, vector<32x32xf32>, vector<8x32xf32> -> vector<8x32xf32>
    %c0_3 = arith.constant 0 : index
    %c0_4 = arith.constant 0 : index
    %3 = vector.load %arg3[%c0_3, %c0_4] : memref<1x32xf32, #tpu.memory_space<vmem>>, vector<1x32xf32>
    %4 = vector.broadcast %3 : vector<1x32xf32> to vector<8x32xf32>
    %5 = arith.addf %2, %4 : vector<8x32xf32>
    %c0_5 = arith.constant 0 : index
    %c0_6 = arith.constant 0 : index
    %6 = vector.load %arg4[%c0_5, %c0_6] : memref<32x128xf32, #tpu.memory_space<vmem>>, vector<32x128xf32>
    %cst_7 = arith.constant dense<0.000000e+00> : vector<8x128xf32>
    %7 = tpu.matmul %5, %6, %cst_7 {dimension_numbers = #tpu.dot_dimension_numbers<[1], [0], [0], [1], [0, 0, 1, 1], [], []>} : vector<8x32xf32>, vector<32x128xf32>, vector<8x128xf32> -> vector<8x128xf32>
    %c0_8 = arith.constant 0 : index
    %c0_9 = arith.constant 0 : index
    %8 = vector.load %arg5[%c0_8, %c0_9] : memref<1x128xf32, #tpu.memory_space<vmem>>, vector<1x128xf32>
    %9 = vector.broadcast %8 : vector<1x128xf32> to vector<8x128xf32>
    %10 = arith.addf %7, %9 : vector<8x128xf32>
    %c0_10 = arith.constant 0 : index
    %c0_11 = arith.constant 0 : index
    %11 = vector.load %arg6[%c0_10, %c0_11] : memref<8x128xf32, #tpu.memory_space<vmem>>, vector<8x128xf32>
    tpu.vector_store %arg6[%c0_10, %c0_11], %10 {strides = array<i32>} : memref<8x128xf32, #tpu.memory_space<vmem>>, vector<8x128xf32>,
    return
  }
  func.func @transform_0(%arg0: i32) -> (i32, i32) {
    %c0_i32 = arith.constant 0 : i32
    %c0_i32_0 = arith.constant 0 : i32
    return %arg0, %c0_i32 : i32, i32
  }
  func.func @transform_1(%arg0: i32) -> (i32, i32) {
    %c0_i32 = arith.constant 0 : i32
    %c0_i32_0 = arith.constant 0 : i32
    %c0_i32_1 = arith.constant 0 : i32
    return %c0_i32, %c0_i32_0 : i32, i32
  }
  func.func @transform_2(%arg0: i32) -> (i32, i32) {
    %c0_i32 = arith.constant 0 : i32
    %c0_i32_0 = arith.constant 0 : i32
    %c0_i32_1 = arith.constant 0 : i32
    return %c0_i32, %c0_i32_0 : i32, i32
  }
  func.func @transform_3(%arg0: i32) -> (i32, i32) {
    %c0_i32 = arith.constant 0 : i32
    %c0_i32_0 = arith.constant 0 : i32
    %c0_i32_1 = arith.constant 0 : i32
    return %c0_i32, %c0_i32_0 : i32, i32
  }
  func.func @transform_4(%arg0: i32) -> (i32, i32) {
    %c0_i32 = arith.constant 0 : i32
    %c0_i32_0 = arith.constant 0 : i32
    %c0_i32_1 = arith.constant 0 : i32
    return %c0_i32, %c0_i32_0 : i32, i32
  }
  func.func @transform_5(%arg0: i32) -> (i32, i32) {
    %c0_i32 = arith.constant 0 : i32
    %c0_i32_0 = arith.constant 0 : i32
    return %arg0, %c0_i32 : i32, i32
  }
}

</mosaic_0001>

<bundles_post_ra>
// kernel: receiver_forward.1
= control target key start
LH: loop header
LB: loop body
LE: loop exit
PB: predicated region body
PF: predicated region fallthrough
CT: control target
= control target key end

     0   :  { %s200_s0 = inlined_call_operand.vmem [shape: f32[8,32], index: 0, kind: input, shape index: {}]   ;;  %s201_s1 = inlined_call_operand.vmem [shape: f32[32,32], index: 1, kind: input, shape index: {}]   ;;  %s202_s2 = inlined_call_operand.vmem [shape: f32[1,32], index: 2, kind: input, shape index: {}]   ;;  %s203_s3 = inlined_call_operand.vmem [shape: f32[32,128], index: 3, kind: input, shape index: {}]   ;;  %s204_s4 = inlined_call_operand.vmem [shape: f32[1,128], index: 4, kind: input, shape index: {}]   ;;  %s205_s5 = inlined_call_operand.hbm [shape: f32[8,128], index: 5, kind: output, shape index: {}]  }
   0x1   :  { %v25_v0 = vld [vmem:[%s201_s1 + $0x18] sm:$0xff]  ;;  %v24_v1 = vld [vmem:[%s201_s1 + $0x10] sm:$0xff]  ;;  %v23_v3 = vld [vmem:[%s201_s1 + $0x8] sm:$0xff] }
   0x2   :  { %46 = vmatpush.msra.mxu0 %v25_v0  ;;  %v57_v2 = vld [vmem:[%s203_s3 + $0x18] sm:$0xff]  ;;  %v56_v4 = vld [vmem:[%s203_s3 + $0x10] sm:$0xff] }
   0x3   :  { %77 = vmatpush.msra.mxu1 %v57_v2 }
   0x4   :  { %47 = vmatpush.msra.mxu0 %v24_v1 }
   0x5   :  { %10 = vsyncpa [#allocation3], 0  ;;  %v22_v5 = vld [vmem:[%s201_s1] sm:$0xff]  ;;  %78 = vmatpush.msra.mxu1 %v56_v4  ;;  %vm30_vm0 = vcmask 261120   ;;  %v55_v7 = vld [vmem:[%s203_s3 + $0x8] sm:$0xff]  ;;  %s133_s13 = smov [#allocation2]  }
   0x6   :  { %48 = vmatpush.msra.mxu0 %v23_v3  ;;  %v21_v6 = vld [vmem:[%s200_s0] sm:$0xff]  ;;  %s91_s14 = sshll.u32 %s133_s13, 4  ;;  %s93_s17 = sshll.u32 %s205_s5, 4  ;;  %s92_s14 = int_to_ptr.vmem [resolvable:$true] %s91_s14  ;;  %s94_s17 = int_to_ptr.hbm [resolvable:$true] %s93_s17 }
   0x7   :  { %79 = vmatpush.msra.mxu1 %v55_v7  ;;  %v54_v8 = vld [vmem:[%s203_s3] sm:$0xff] }
   0x8   :  { %49 = vmatpush.msra.mxu0 %v22_v5  ;;  %v105_v9 = vld [vmem:[%s202_s2] ss:$0 sm:$0xff] }
   0x9   :  { %102 = vmatmul.msk.f32.vlgmr.msra.gmra.mxu0 %vm30_vm0, %v21_v6  ;;  %80 = vmatpush.msra.mxu1 %v54_v8  ;;  %v106_v12 = vld [vmem:[%s204_s4] ss:$0 sm:$0xff] }
  0x86   :  { %v51_v10 = vpop.f32.mrf.mxu0 }
  0x87   :  { %v52_v11 = vadd.f32 %v105_v9, %v51_v10 }
  0x89   :  { %103 = vmatmul.msk.f32.vlgmr.msra.gmra.mxu1 %vm30_vm0, %v52_v11 }
 0x106   :  { %v82_v13 = vpop.f32.mrf.mxu1 }
 0x107   :  { %v83_v14 = vadd.f32 %v106_v12, %v82_v13 }
 0x109   :  { %85 = vst [vmem:[#allocation2] sm:$0xff] %v83_v14 }
 0x10a   :  { %96 = dma.vmem_to_hbm [thread:$0]  %s92_s14, 128, %s94_s17, [#allocation3]  }
 0x10b   :  { %131 = dma.done.wait [#allocation3], 128  }
 0x10c   :  { %132 = vsyncadd [#allocation3], 4294967168 }
 0x10d   :  { %101 = vsyncpa [#allocation3], 1 }

</bundles_post_ra>
